<compile_context>
chip_gen: v5e
topology: v5e:2x2
jax: 0.10.0
libtpu: 0.0.40
codegen_flags: <defaults>
</compile_context>

<pallas_src>
import functools
import math

import numpy as np
import jax
import jax.numpy as jnp
from jax import lax
from jax.experimental import pallas as pl
from jax.experimental.pallas import tpu as pltpu

EPS = 1e-6


def _vmem_limit_bytes():
    """Per-generation scoped-VMEM budget (v7x has only 64 MiB physical VMEM)."""
    try:
        kind = jax.devices()[0].device_kind.lower()
    except Exception:
        return 64 * 1024 * 1024
    if "v7" in kind:
        return 48 * 1024 * 1024
    if "v5" in kind or "v6" in kind:
        return 100 * 1024 * 1024
    return 64 * 1024 * 1024


# ----------------------------- in-kernel helpers ----------------------------

def _layer_norm(x, scale, shift):
    # x: (rows, D) f32; scale/shift: (1, D) f32
    mean = jnp.mean(x, axis=-1, keepdims=True)
    var = jnp.mean((x - mean) ** 2, axis=-1, keepdims=True)
    return scale * ((x - mean) * lax.rsqrt(var + EPS)) + shift


def _gelu_tanh(x):
    c = jnp.float32(math.sqrt(2.0 / math.pi))
    return 0.5 * x * (1.0 + jnp.tanh(c * (x + 0.044715 * (x * x * x))))


# ------------------------------ kernels -------------------------------------

def ln_qkv_kernel(x_ref, s_ref, b_ref, wqkv_ref, q_ref, k_ref, v_ref, *, d):
    """LayerNorm1 + fused QKV projection for one row tile.

    The attention scale 1/sqrt(d_head) is already folded into the W_q columns
    of wqkv_ref (done once in prepare_params), so no per-element fixup here.
    """
    x = x_ref[...].astype(jnp.float32)
    h = _layer_norm(x, s_ref[...], b_ref[...])
    qkv = jnp.dot(h.astype(wqkv_ref.dtype), wqkv_ref[...],
                  preferred_element_type=jnp.float32)          # (tm, 3D)
    q_ref[...] = qkv[:, :d].astype(q_ref.dtype)
    k_ref[...] = qkv[:, d:2 * d].astype(k_ref.dtype)
    v_ref[...] = qkv[:, 2 * d:].astype(v_ref.dtype)


def flash_attn_kernel(qi_map_ref, kv_map_ref, q_ref, k_ref, v_ref, o_ref,
                      m_sc, l_sc, acc_sc, *, n_heads, d_head, tq, tkv,
                      exact_recip):
    """Causal flash attention, all heads of one batch per grid step.

    Grid = (B, lower-triangular (qi, kv) tile pairs).  The pair axis is driven
    by scalar-prefetched qi/kv maps so causally-dead KV tiles are never DMA'd.
    Only the diagonal tile applies the mask; below-diagonal tiles are unmasked.
    """
    t = pl.program_id(1)
    qi = qi_map_ref[t]
    kv = kv_map_ref[t]

    @pl.when(kv == 0)
    def _init():
        m_sc[...] = jnp.full(m_sc.shape, -jnp.inf, jnp.float32)
        l_sc[...] = jnp.zeros(l_sc.shape, jnp.float32)
        acc_sc[...] = jnp.zeros(acc_sc.shape, jnp.float32)

    q_all = q_ref[0]     # (tq, H*dh), q pre-scaled by 1/sqrt(d_head)
    k_all = k_ref[0]     # (tkv, H*dh)
    v_all = v_ref[0]     # (tkv, H*dh)

    def process(masked):
        if masked:
            # diagonal tile: qi == kv and tq == tkv, so the mask is purely local
            rr = lax.broadcasted_iota(jnp.int32, (tq, tkv), 0)
            cc = lax.broadcasted_iota(jnp.int32, (tq, tkv), 1)
            future = cc > rr
        for h in range(n_heads):
            lo = h * d_head
            hi = lo + d_head
            q_h = q_all[:, lo:hi]                               # (tq, dh)
            k_h = k_all[:, lo:hi]                               # (tkv, dh)
            v_h = v_all[:, lo:hi]                               # (tkv, dh)
            s = lax.dot_general(q_h, k_h, (((1,), (1,)), ((), ())),
                                preferred_element_type=jnp.float32)  # (tq, tkv)
            if masked:
                s = jnp.where(future, -jnp.inf, s)
            m_prev = m_sc[h]                                    # (tq, 1)
            m_new = jnp.maximum(m_prev, jnp.max(s, axis=-1, keepdims=True))
            alpha = jnp.exp(m_prev - m_new)
            p = jnp.exp(s - m_new)
            l_sc[h] = alpha * l_sc[h] + jnp.sum(p, axis=-1, keepdims=True)
            acc_sc[h] = alpha * acc_sc[h] + jnp.dot(
                p.astype(v_h.dtype), v_h, preferred_element_type=jnp.float32)
            m_sc[h] = m_new

    @pl.when(kv < qi)      # strictly below the diagonal: no mask needed
    def _full():
        process(masked=False)

    @pl.when(kv == qi)     # diagonal tile: masked path
    def _diag():
        process(masked=True)

    @pl.when(kv == qi)     # the diagonal tile is always the last one for this qi
    def _finalize():
        outs = []
        for h in range(n_heads):
            l_h = l_sc[h]
            inv_l = (1.0 / l_h) if exact_recip else pl.reciprocal(l_h, approx=True)
            outs.append(acc_sc[h] * inv_l)
        # single lane-dense (tq, H*dh) store
        o_ref[0] = jnp.concatenate(outs, axis=-1).astype(o_ref.dtype)


def attn_out_ffn_kernel(x_ref, ctx_ref, wo_ref, bo_ref, ln2s_ref, ln2b_ref,
                        w1_ref, b1_ref, w2_ref, b2_ref, out_ref):
    """out_proj + residual + LayerNorm2 + FeedForward(GeLU) + residual, one row tile."""
    x = x_ref[...].astype(jnp.float32)
    attn = jnp.dot(ctx_ref[...], wo_ref[...], preferred_element_type=jnp.float32)
    x1 = x + attn + bo_ref[...]
    h = _layer_norm(x1, ln2s_ref[...], ln2b_ref[...])
    f = jnp.dot(h.astype(w1_ref.dtype), w1_ref[...], preferred_element_type=jnp.float32)
    f = _gelu_tanh(f + b1_ref[...])
    f = jnp.dot(f.astype(w2_ref.dtype), w2_ref[...], preferred_element_type=jnp.float32)
    out_ref[...] = (x1 + f + b2_ref[...]).astype(out_ref.dtype)


def final_ln_kernel(x_ref, s_ref, b_ref, o_ref):
    """Final LayerNorm (hoisted out of the vocab-tiled head loop)."""
    x = x_ref[...].astype(jnp.float32)
    o_ref[...] = _layer_norm(x, s_ref[...], b_ref[...]).astype(o_ref.dtype)


def head_kernel(h_ref, w_ref, o_ref):
    """Tied-embedding logits for one (row tile, vocab tile)."""
    o_ref[...] = jnp.dot(h_ref[...], w_ref[...],
                         preferred_element_type=jnp.float32).astype(o_ref.dtype)


# ------------------------------- wrappers ------------------------------------

def _run_ln_qkv(x, blk, *, tm, d, vmem_limit):
    n_rows = x.shape[0]
    cd = blk["wqkv_t"].dtype
    kernel = functools.partial(ln_qkv_kernel, d=d)
    return pl.pallas_call(
        kernel,
        out_shape=[jax.ShapeDtypeStruct((n_rows, d), cd)] * 3,
        grid_spec=pltpu.PrefetchScalarGridSpec(
            num_scalar_prefetch=0,
            grid=(n_rows // tm,),
            in_specs=[
                pl.BlockSpec((tm, d), lambda i: (i, 0)),
                pl.BlockSpec((1, d), lambda i: (0, 0)),
                pl.BlockSpec((1, d), lambda i: (0, 0)),
                # TODO(synk): K/N-tile (or single-buffer) this weight for large d_emb.
                pl.BlockSpec((d, 3 * d), lambda i: (0, 0)),
            ],
            out_specs=[pl.BlockSpec((tm, d), lambda i: (i, 0))] * 3,
        ),
        compiler_params=pltpu.CompilerParams(
            dimension_semantics=("parallel",),
            vmem_limit_bytes=vmem_limit),
    )(x, blk["ln1_s"], blk["ln1_b"], blk["wqkv_t"])


def _run_flash_attention(q, k, v, *, n_heads, tq, tkv, exact_recip, vmem_limit):
    B, T, D = q.shape
    dh = D // n_heads
    assert tq == tkv, "causal tile bookkeeping assumes tq == tkv"
    nq = T // tq
    # Flattened lower-triangular (qi, kv) pairs: within each qi, kv runs 0..qi,
    # so kv==0 is the init step and kv==qi (the diagonal) is the finalize step.
    pairs = [(qi, kv) for qi in range(nq) for kv in range(qi + 1)]
    qi_map = jnp.asarray([p[0] for p in pairs], jnp.int32)
    kv_map = jnp.asarray([p[1] for p in pairs], jnp.int32)

    kernel = functools.partial(flash_attn_kernel, n_heads=n_heads, d_head=dh,
                               tq=tq, tkv=tkv, exact_recip=exact_recip)
    return pl.pallas_call(
        kernel,
        out_shape=jax.ShapeDtypeStruct((B, T, D), q.dtype),
        grid_spec=pltpu.PrefetchScalarGridSpec(
            num_scalar_prefetch=2,
            grid=(B, len(pairs)),
            in_specs=[
                pl.BlockSpec((1, tq, D), lambda b, t, qi_m, kv_m: (b, qi_m[t], 0)),
                pl.BlockSpec((1, tkv, D), lambda b, t, qi_m, kv_m: (b, kv_m[t], 0)),
                pl.BlockSpec((1, tkv, D), lambda b, t, qi_m, kv_m: (b, kv_m[t], 0)),
            ],
            out_specs=pl.BlockSpec((1, tq, D),
                                   lambda b, t, qi_m, kv_m: (b, qi_m[t], 0)),
            scratch_shapes=[
                pltpu.VMEM((n_heads, tq, 1), jnp.float32),    # running max per head
                pltpu.VMEM((n_heads, tq, 1), jnp.float32),    # running denom per head
                pltpu.VMEM((n_heads, tq, dh), jnp.float32),   # output accumulator
            ],
        ),
        compiler_params=pltpu.CompilerParams(
            dimension_semantics=("parallel", "arbitrary"),
            vmem_limit_bytes=vmem_limit),
    )(qi_map, kv_map, q, k, v)


def _run_attn_out_ffn(x, ctx, blk, *, tm, d, vmem_limit):
    n_rows = x.shape[0]
    d_ff = blk["w1_t"].shape[1]
    return pl.pallas_call(
        attn_out_ffn_kernel,
        out_shape=jax.ShapeDtypeStruct((n_rows, d), jnp.float32),   # f32 residual stream
        grid_spec=pltpu.PrefetchScalarGridSpec(
            num_scalar_prefetch=0,
            grid=(n_rows // tm,),
            in_specs=[
                pl.BlockSpec((tm, d), lambda i: (i, 0)),       # x (residual stream)
                pl.BlockSpec((tm, d), lambda i: (i, 0)),       # attention context
                pl.BlockSpec((d, d), lambda i: (0, 0)),        # wo_t
                pl.BlockSpec((1, d), lambda i: (0, 0)),        # bo
                pl.BlockSpec((1, d), lambda i: (0, 0)),        # ln2 scale
                pl.BlockSpec((1, d), lambda i: (0, 0)),        # ln2 shift
                pl.BlockSpec((d, d_ff), lambda i: (0, 0)),     # w1_t
                pl.BlockSpec((1, d_ff), lambda i: (0, 0)),     # b1
                pl.BlockSpec((d_ff, d), lambda i: (0, 0)),     # w2_t
                pl.BlockSpec((1, d), lambda i: (0, 0)),        # b2
            ],
            out_specs=pl.BlockSpec((tm, d), lambda i: (i, 0)),
        ),
        compiler_params=pltpu.CompilerParams(
            dimension_semantics=("parallel",),
            vmem_limit_bytes=vmem_limit),
    )(x, ctx, blk["wo_t"], blk["bo"], blk["ln2_s"], blk["ln2_b"],
      blk["w1_t"], blk["b1"], blk["w2_t"], blk["b2"])


def _run_final_ln(x, s, b, out_dtype, *, tm, d, vmem_limit):
    n_rows = x.shape[0]
    return pl.pallas_call(
        final_ln_kernel,
        out_shape=jax.ShapeDtypeStruct((n_rows, d), out_dtype),
        grid_spec=pltpu.PrefetchScalarGridSpec(
            num_scalar_prefetch=0,
            grid=(n_rows // tm,),
            in_specs=[
                pl.BlockSpec((tm, d), lambda i: (i, 0)),
                pl.BlockSpec((1, d), lambda i: (0, 0)),
                pl.BlockSpec((1, d), lambda i: (0, 0)),
            ],
            out_specs=pl.BlockSpec((tm, d), lambda i: (i, 0)),
        ),
        compiler_params=pltpu.CompilerParams(
            dimension_semantics=("parallel",),
            vmem_limit_bytes=vmem_limit),
    )(x, s, b)


def _run_head(h, wtok_t, *, tm, tv, vmem_limit):
    n_rows, d = h.shape
    v = wtok_t.shape[1]
    return pl.pallas_call(
        head_kernel,
        out_shape=jax.ShapeDtypeStruct((n_rows, v), jnp.float32),
        grid_spec=pltpu.PrefetchScalarGridSpec(
            num_scalar_prefetch=0,
            # vocab OUTER, rows inner: the (d, tv) weight tile is DMA'd once per
            # vocab tile; only the small (tm, d) activation tile is re-streamed.
            grid=(v // tv, n_rows // tm),
            in_specs=[
                pl.BlockSpec((tm, d), lambda j, i: (i, 0)),
                pl.BlockSpec((d, tv), lambda j, i: (0, j)),
            ],
            out_specs=pl.BlockSpec((tm, tv), lambda j, i: (i, j)),
        ),
        compiler_params=pltpu.CompilerParams(
            dimension_semantics=("parallel", "parallel"),
            vmem_limit_bytes=vmem_limit),
    )(h, wtok_t)


# ------------------------ parameter prep (once, outside kernels) -------------

def prepare_params(params, compute_dtype, n_heads):
    """Pre-transpose PyTorch-layout (out,in) weights, fuse QKV, fold the
    attention scale into W_q, cast to the compute dtype."""
    cd = compute_dtype
    d = params["tok_emb"].shape[1]
    inv_sqrt_dh = jnp.float32(1.0 / math.sqrt(d // n_heads))
    blocks = []
    for blk in params["blocks"]:
        wq_t = blk["wq"].T * inv_sqrt_dh     # fold 1/sqrt(d_head) into W_q
        blocks.append({
            "ln1_s": blk["ln1_s"], "ln1_b": blk["ln1_b"],
            "wqkv_t": jnp.concatenate([wq_t, blk["wk"].T, blk["wv"].T],
                                      axis=1).astype(cd),
            "wo_t": blk["wo"].T.astype(cd),
            "bo": blk["bo"],
            "ln2_s": blk["ln2_s"], "ln2_b": blk["ln2_b"],
            "w1_t": blk["w1"].T.astype(cd), "b1": blk["b1"],
            "w2_t": blk["w2"].T.astype(cd), "b2": blk["b2"],
        })
    return {
        "fln_s": params["fln_s"], "fln_b": params["fln_b"],
        "wtok_t": params["tok_emb"].T.astype(cd),   # tied output head, (D, V)
        "blocks": blocks,
    }


# ------------------------------ forward pass ---------------------------------

def gpt_forward(in_idx, params, n_heads, *, compute_dtype=jnp.bfloat16,
                block_rows=256, seq_tile=256, vocab_tile=512):
    p = prepare_params(params, compute_dtype, n_heads)
    B, T = in_idx.shape
    V, D = params["tok_emb"].shape
    H = n_heads
    n_rows = B * T
    vmem_limit = _vmem_limit_bytes()

    tm = min(block_rows, n_rows)
    tq = min(seq_tile, T)
    tv = min(vocab_tile, V)
    assert n_rows % tm == 0 and T % tq == 0 and V % tv == 0
    exact_recip = (np.dtype(compute_dtype) == np.dtype(jnp.float32))

    # embedding lookup + positional embedding (plain-JAX glue).
    # TODO(synk): drop_emb / attention dropout / drop_shortcut are identity in eval mode.
    x = jnp.take(params["tok_emb"], in_idx, axis=0) + params["pos_emb"][:T][None]
    x = x.reshape(n_rows, D).astype(jnp.float32)   # residual stream kept in f32

    for blk in p["blocks"]:
        q, k, v = _run_ln_qkv(x, blk, tm=tm, d=D, vmem_limit=vmem_limit)
        # free contiguous reshapes only — heads stay packed along the lane dim
        ctx = _run_flash_attention(q.reshape(B, T, D), k.reshape(B, T, D),
                                   v.reshape(B, T, D), n_heads=H, tq=tq, tkv=tq,
                                   exact_recip=exact_recip, vmem_limit=vmem_limit)
        x = _run_attn_out_ffn(x, ctx.reshape(n_rows, D), blk, tm=tm, d=D,
                              vmem_limit=vmem_limit)

    h = _run_final_ln(x, p["fln_s"], p["fln_b"], compute_dtype, tm=tm, d=D,
                      vmem_limit=vmem_limit)
    logits = _run_head(h, p["wtok_t"], tm=tm, tv=tv, vmem_limit=vmem_limit)
    return logits.reshape(B, T, V)


# ------------------------- deterministic parameter init ----------------------

def init_params(key, d_vocab, d_emb, context_length, n_layers):
    keys = jax.random.split(key, 2 + n_layers * 6)
    ki = iter(keys)

    def normal(k, shape):
        return 0.02 * jax.random.normal(k, shape, jnp.float32)

    params = {
        "tok_emb": normal(next(ki), (d_vocab, d_emb)),
        "pos_emb": normal(next(ki), (context_length, d_emb)),
        "fln_s": jnp.ones((1, d_emb), jnp.float32),
        "fln_b": jnp.zeros((1, d_emb), jnp.float32),
        "blocks": [],
    }
    for _ in range(n_layers):
        params["blocks"].append({
            "ln1_s": jnp.ones((1, d_emb), jnp.float32),
            "ln1_b": jnp.zeros((1, d_emb), jnp.float32),
            "wq": normal(next(ki), (d_emb, d_emb)),
            "wk": normal(next(ki), (d_emb, d_emb)),
            "wv": normal(next(ki), (d_emb, d_emb)),
            "wo": normal(next(ki), (d_emb, d_emb)),
            "bo": jnp.zeros((1, d_emb), jnp.float32),
            "ln2_s": jnp.ones((1, d_emb), jnp.float32),
            "ln2_b": jnp.zeros((1, d_emb), jnp.float32),
            "w1": normal(next(ki), (4 * d_emb, d_emb)),
            "b1": jnp.zeros((1, 4 * d_emb), jnp.float32),
            "w2": normal(next(ki), (d_emb, 4 * d_emb)),
            "b2": jnp.zeros((1, d_emb), jnp.float32),
        })
    return params


# ------------------------------ pure-JAX reference ---------------------------

def _ref_forward(in_idx, params, n_heads, weight_dtype=jnp.float32):
    def w_(a):  # optional weight quantization to mirror the kernel's compute dtype
        return a.astype(weight_dtype).astype(jnp.float32)

    def ln(x, s, b):
        m = x.mean(-1, keepdims=True)
        v = ((x - m) ** 2).mean(-1, keepdims=True)
        return s * (x - m) / jnp.sqrt(v + EPS) + b

    B, T = in_idx.shape
    x = jnp.take(params["tok_emb"], in_idx, axis=0) + params["pos_emb"][:T][None]
    for blk in params["blocks"]:
        D = x.shape[-1]
        dh = D // n_heads
        h = ln(x, blk["ln1_s"], blk["ln1_b"])
        q = h @ w_(blk["wq"]).T
        k = h @ w_(blk["wk"]).T
        v = h @ w_(blk["wv"]).T
        q = q.reshape(B, T, n_heads, dh).transpose(0, 2, 1, 3)
        k = k.reshape(B, T, n_heads, dh).transpose(0, 2, 1, 3)
        v = v.reshape(B, T, n_heads, dh).transpose(0, 2, 1, 3)
        s = jnp.einsum("bhqd,bhkd->bhqk", q, k)
        mask = jnp.triu(jnp.ones((T, T), bool), 1)
        s = jnp.where(mask, -jnp.inf, s) / math.sqrt(dh)
        p = jax.nn.softmax(s, axis=-1)
        ctx = jnp.einsum("bhqk,bhkd->bhqd", p, v).transpose(0, 2, 1, 3).reshape(B, T, D)
        x = x + ctx @ w_(blk["wo"]).T + blk["bo"]
        h = ln(x, blk["ln2_s"], blk["ln2_b"])
        f = h @ w_(blk["w1"]).T + blk["b1"]
        c = math.sqrt(2.0 / math.pi)
        f = 0.5 * f * (1.0 + jnp.tanh(c * (f + 0.044715 * f ** 3)))
        x = x + f @ w_(blk["w2"]).T + blk["b2"]
    x = ln(x, params["fln_s"], params["fln_b"])
    return x @ w_(params["tok_emb"]).T


# ----------------------------------- main -------------------------------------

if __name__ == "__main__":
    D_VOCAB = 256     # multiple of 128 -> lane-dense vocab-tiled head
    D_EMB = 128       # lane-dense embedding dim
    CONTEXT = 32
    N_LAYERS = 2
    N_HEADS = 4       # d_head = 32
    B, T = 2, 16

    key = jax.random.PRNGKey(0)
    pkey, ikey = jax.random.split(key)
    params = init_params(pkey, D_VOCAB, D_EMB, CONTEXT, N_LAYERS)
    in_idx = jax.random.randint(ikey, (B, T), 0, D_VOCAB, dtype=jnp.int32)

    # Small tiles only to exercise the multi-tile grid paths at these toy shapes;
    # benchmark-sized defaults are block_rows=256, seq_tile=256, vocab_tile=512.
    tiles = dict(block_rows=16, seq_tile=8, vocab_tile=128)

    # exact path: f32 compute, tight check against the pure-JAX reference
    logits_f32 = gpt_forward(in_idx, params, N_HEADS,
                             compute_dtype=jnp.float32, **tiles)
    logits_f32 = jax.block_until_ready(logits_f32)
    ref_f32 = _ref_forward(in_idx, params, N_HEADS)
    assert logits_f32.shape == (B, T, D_VOCAB)
    assert jnp.allclose(logits_f32, ref_f32, rtol=5e-3, atol=5e-3), (
        "f32 mismatch, max abs err = %g"
        % float(jnp.max(jnp.abs(logits_f32 - ref_f32))))

    # fast path: bf16 weights + bf16 q/k/v/ctx (f32 residual + accumulation);
    # compared against a reference using the same bf16-rounded weights.
    logits_bf16 = gpt_forward(in_idx, params, N_HEADS,
                              compute_dtype=jnp.bfloat16, **tiles)
    logits_bf16 = jax.block_until_ready(logits_bf16)
    ref_bf16 = _ref_forward(in_idx, params, N_HEADS, weight_dtype=jnp.bfloat16)
    assert jnp.allclose(logits_bf16, ref_bf16, rtol=4e-2, atol=4e-2), (
        "bf16 mismatch, max abs err = %g"
        % float(jnp.max(jnp.abs(logits_bf16 - ref_bf16))))

    print("KERNEL_OK")
</pallas_src>

<mosaic_0001>
module attributes {stable_mosaic.version = 11 : i64} {
  func.func @ln_qkv_kernel(%arg0: i32, %arg1: memref<16x128xf32, #tpu.memory_space<vmem>>, %arg2: memref<1x128xf32, #tpu.memory_space<vmem>>, %arg3: memref<1x128xf32, #tpu.memory_space<vmem>>, %arg4: memref<128x384xf32, #tpu.memory_space<vmem>>, %arg5: memref<16x128xf32, #tpu.memory_space<vmem>>, %arg6: memref<16x128xf32, #tpu.memory_space<vmem>>, %arg7: memref<16x128xf32, #tpu.memory_space<vmem>>) attributes {dimension_semantics = [#tpu.dimension_semantics<parallel>], iteration_bounds = array<i64: 2>, scalar_prefetch = 0 : i64, scratch_operands = 0 : i64, tpu.core_type = #tpu.core_type<tc>, window_params = [{transform_indices = @transform_0, window_bounds = array<i64: 16, 128>}, {pipeline_mode = #tpu.pipeline_mode<synchronous>, transform_indices = @transform_1, window_bounds = array<i64: 1, 128>}, {pipeline_mode = #tpu.pipeline_mode<synchronous>, transform_indices = @transform_2, window_bounds = array<i64: 1, 128>}, {pipeline_mode = #tpu.pipeline_mode<synchronous>, transform_indices = @transform_3, window_bounds = array<i64: 128, 384>}, {transform_indices = @transform_4, window_bounds = array<i64: 16, 128>}, {transform_indices = @transform_5, window_bounds = array<i64: 16, 128>}, {transform_indices = @transform_6, window_bounds = array<i64: 16, 128>}]} {
    %c0 = arith.constant 0 : index
    %c0_0 = arith.constant 0 : index
    %0 = vector.load %arg1[%c0, %c0_0] : memref<16x128xf32, #tpu.memory_space<vmem>>, vector<16x128xf32>
    %c0_1 = arith.constant 0 : index
    %c0_2 = arith.constant 0 : index
    %1 = vector.load %arg2[%c0_1, %c0_2] : memref<1x128xf32, #tpu.memory_space<vmem>>, vector<1x128xf32>
    %c0_3 = arith.constant 0 : index
    %c0_4 = arith.constant 0 : index
    %2 = vector.load %arg3[%c0_3, %c0_4] : memref<1x128xf32, #tpu.memory_space<vmem>>, vector<1x128xf32>
    %cst = arith.constant dense<0.000000e+00> : vector<16xf32>
    %3 = vector.multi_reduction <add>, %0, %cst [1] : vector<16x128xf32> to vector<16xf32>
    %4 = vector.shape_cast %3 : vector<16xf32> to vector<16x1xf32>
    %cst_5 = arith.constant 1.280000e+02 : f32
    %5 = vector.broadcast %cst_5 : f32 to vector<16x1xf32>
    %6 = arith.divf %4, %5 : vector<16x1xf32>
    %7 = vector.broadcast %6 : vector<16x1xf32> to vector<16x128xf32>
    %8 = arith.subf %0, %7 : vector<16x128xf32>
    %9 = arith.mulf %8, %8 : vector<16x128xf32>
    %cst_6 = arith.constant dense<0.000000e+00> : vector<16xf32>
    %10 = vector.multi_reduction <add>, %9, %cst_6 [1] : vector<16x128xf32> to vector<16xf32>
    %11 = vector.shape_cast %10 : vector<16xf32> to vector<16x1xf32>
    %cst_7 = arith.constant 1.280000e+02 : f32
    %12 = vector.broadcast %cst_7 : f32 to vector<16x1xf32>
    %13 = arith.divf %11, %12 : vector<16x1xf32>
    %14 = vector.broadcast %6 : vector<16x1xf32> to vector<16x128xf32>
    %15 = arith.subf %0, %14 : vector<16x128xf32>
    %cst_8 = arith.constant 9.99999997E-7 : f32
    %16 = vector.broadcast %cst_8 : f32 to vector<16x1xf32>
    %17 = arith.addf %13, %16 : vector<16x1xf32>
    %18 = math.rsqrt %17 : vector<16x1xf32>
    %19 = vector.broadcast %18 : vector<16x1xf32> to vector<16x128xf32>
    %20 = arith.mulf %15, %19 : vector<16x128xf32>
    %21 = vector.broadcast %1 : vector<1x128xf32> to vector<16x128xf32>
    %22 = arith.mulf %21, %20 : vector<16x128xf32>
    %23 = vector.broadcast %2 : vector<1x128xf32> to vector<16x128xf32>
    %24 = arith.addf %22, %23 : vector<16x128xf32>
    %c0_9 = arith.constant 0 : index
    %c0_10 = arith.constant 0 : index
    %25 = vector.load %arg4[%c0_9, %c0_10] : memref<128x384xf32, #tpu.memory_space<vmem>>, vector<128x384xf32>
    %cst_11 = arith.constant dense<0.000000e+00> : vector<16x384xf32>
    %26 = tpu.matmul %24, %25, %cst_11 {dimension_numbers = #tpu.dot_dimension_numbers<[1], [0], [0], [1], [0, 0, 1, 1], [], []>} : vector<16x128xf32>, vector<128x384xf32>, vector<16x384xf32> -> vector<16x384xf32>
    %27 = vector.extract_strided_slice %26 {offsets = [0, 0], sizes = [16, 128], strides = [1, 1]} : vector<16x384xf32> to vector<16x128xf32>
    %c0_12 = arith.constant 0 : index
    %c0_13 = arith.constant 0 : index
    %28 = vector.load %arg5[%c0_12, %c0_13] : memref<16x128xf32, #tpu.memory_space<vmem>>, vector<16x128xf32>
    tpu.vector_store %arg5[%c0_12, %c0_13], %27 {strides = array<i32>} : memref<16x128xf32, #tpu.memory_space<vmem>>, vector<16x128xf32>,
    %29 = vector.extract_strided_slice %26 {offsets = [0, 128], sizes = [16, 128], strides = [1, 1]} : vector<16x384xf32> to vector<16x128xf32>
    %c0_14 = arith.constant 0 : index
    %c0_15 = arith.constant 0 : index
    %30 = vector.load %arg6[%c0_14, %c0_15] : memref<16x128xf32, #tpu.memory_space<vmem>>, vector<16x128xf32>
    tpu.vector_store %arg6[%c0_14, %c0_15], %29 {strides = array<i32>} : memref<16x128xf32, #tpu.memory_space<vmem>>, vector<16x128xf32>,
    %31 = vector.extract_strided_slice %26 {offsets = [0, 256], sizes = [16, 128], strides = [1, 1]} : vector<16x384xf32> to vector<16x128xf32>
    %c0_16 = arith.constant 0 : index
    %c0_17 = arith.constant 0 : index
    %32 = vector.load %arg7[%c0_16, %c0_17] : memref<16x128xf32, #tpu.memory_space<vmem>>, vector<16x128xf32>
    tpu.vector_store %arg7[%c0_16, %c0_17], %31 {strides = array<i32>} : memref<16x128xf32, #tpu.memory_space<vmem>>, vector<16x128xf32>,
    return
  }
  func.func @transform_0(%arg0: i32) -> (i32, i32) {
    %c0_i32 = arith.constant 0 : i32
    %c0_i32_0 = arith.constant 0 : i32
    return %arg0, %c0_i32 : i32, i32
  }
  func.func @transform_1(%arg0: i32) -> (i32, i32) {
    %c0_i32 = arith.constant 0 : i32
    %c0_i32_0 = arith.constant 0 : i32
    %c0_i32_1 = arith.constant 0 : i32
    return %c0_i32, %c0_i32_0 : i32, i32
  }
  func.func @transform_2(%arg0: i32) -> (i32, i32) {
    %c0_i32 = arith.constant 0 : i32
    %c0_i32_0 = arith.constant 0 : i32
    %c0_i32_1 = arith.constant 0 : i32
    return %c0_i32, %c0_i32_0 : i32, i32
  }
  func.func @transform_3(%arg0: i32) -> (i32, i32) {
    %c0_i32 = arith.constant 0 : i32
    %c0_i32_0 = arith.constant 0 : i32
    %c0_i32_1 = arith.constant 0 : i32
    return %c0_i32, %c0_i32_0 : i32, i32
  }
  func.func @transform_4(%arg0: i32) -> (i32, i32) {
    %c0_i32 = arith.constant 0 : i32
    %c0_i32_0 = arith.constant 0 : i32
    return %arg0, %c0_i32 : i32, i32
  }
  func.func @transform_5(%arg0: i32) -> (i32, i32) {
    %c0_i32 = arith.constant 0 : i32
    %c0_i32_0 = arith.constant 0 : i32
    return %arg0, %c0_i32 : i32, i32
  }
  func.func @transform_6(%arg0: i32) -> (i32, i32) {
    %c0_i32 = arith.constant 0 : i32
    %c0_i32_0 = arith.constant 0 : i32
    return %arg0, %c0_i32 : i32, i32
  }
}

</mosaic_0001>

<bundles_post_ra>
// kernel: tpu_custom_call.1
= control target key start
LH: loop header
LB: loop body
LE: loop exit
PB: predicated region body
PF: predicated region fallthrough
CT: control target
= control target key end

     0   :  { %s1376_s0 = inlined_call_operand.hbm [shape: f32[32,128], index: 0, kind: input, shape index: {}]   ;;  %s1377_s1 = inlined_call_operand.hbm [shape: f32[1,128], index: 1, kind: input, shape index: {}]   ;;  %s1378_s2 = inlined_call_operand.vmem [shape: f32[1,128], index: 2, kind: input, shape index: {}]   ;;  %s1379_s3 = inlined_call_operand.hbm [shape: f32[128,384], index: 3, kind: input, shape index: {}]   ;;  %s1380_s4 = inlined_call_operand.hbm [shape: f32[32,128], index: 4, kind: output, shape index: {0}]   ;;  %s1381_s5 = inlined_call_operand.hbm [shape: f32[32,128], index: 5, kind: output, shape index: {1}]   ;;  %s1382_s6 = inlined_call_operand.hbm [shape: f32[32,128], index: 6, kind: output, shape index: {2}]  }
   0x1   :  { %1386 = sst [smem:[#allocation18_spill]] %s1376_s0 }
   0x2   :  { %1387 = sst [smem:[#allocation19_spill]] %s1377_s1 }
   0x3   :  { %1388 = sst [smem:[#allocation20_spill]] %s1379_s3 }
   0x4   :  { %12 = vsyncpa [#allocation3], 0 }
   0x5   :  { %14 = vsyncpa [#allocation3 + $0x1], 0 }
   0x6   :  { %15 = vsyncpa [#allocation6], 0 }
   0x7   :  { %16 = vsyncpa [#allocation4], 0 }
   0x8   :  { %18 = vsyncpa [#allocation4 + $0x1], 0 }
   0x9   :  { %19 = vsyncpa [#allocation10], 0 }
   0xa   :  { %21 = vsyncpa [#allocation10 + $0x1], 0  ;;  %s1128_s21 = smov 0   ;;  %s1130_s22 = smov 0  }
   0xb   :  { %s1132_s23 = smov 0   ;;  %s1134_s24 = smov 0  }
   0xc LB: > { %s1149_s25 = sadd.s32 4294967295, %s1082_s24   ;;  %s1383_s26 = sadd.s32 4294967294, %s1082_s24   ;;  %s1082_s24 = sphi %s1134_s24, %s1402_s24   ;;  %s1078_s23 = sphi %s1132_s23, %s1406_s23   ;;  %s1074_s22 = sphi %s1130_s22, %s1405_s22   ;;  %s1070_s21 = sphi %s1128_s21, %s1404_s21  }
   0xd   : > { %s1153_s27 = sadd.s32 1, %s1082_s24   ;;  %s34_s28 = sadd.s32 1, %s1078_s23 }
   0xe   : > { %1389 = sst [smem:[#allocation16_spill]] %s1153_s27  ;;  %s31_s29 = ssub.s32 %s1082_s24, %s1153_s27 }
   0xf   : > { %p41_p0 = scmp.ne.s32.totalorder %s1078_s23, %s1074_s22  ;;  %p32_p1 = scmp.eq.s32.totalorder %s31_s29, 0 }
  0x10   : > { %p42_p2 = scmp.eq.s32.totalorder %s1082_s24, 0  ;;  %p47_p3 = scmp.ne.s32.totalorder %s1074_s22, %s1070_s21 }
  0x11   : > { %p48_p4 = scmp.eq.s32.totalorder %s1149_s25, 0  ;;  %p134_p7 = scmp.eq.s32.totalorder %s1149_s25, 1 }
  0x12   : > { %s1165_s30 = scalar_select %p32_p1, %s1078_s23, %s34_s28  }
  0x13   : > { %p1167_p5 = por %p42_p2, %p41_p0  ;;  %p1173_p6 = por %p48_p4, %p47_p3 }
  0x14   : > { %1390 = sst [smem:[#allocation17_spill]] %s1165_s30  ;;  %p140_p8 = scmp.eq.s32.totalorder %s1383_s26, 1 }
  0x15   : > { %p725_p9 = scmp.ge.s32.totalorder %s1082_s24, 1  ;;  %p199_p10 = scmp.lt.s32.totalorder %s1082_s24, 3 }
  0x16   : > { %p1182_p11 = por %p134_p7, %p41_p0  ;;  %p1186_p12 = por %p140_p8, %p47_p3 }
  0x17   : > { %p1190_p13 = pnand %p725_p9, %p199_p10  ;;  %s1396_s1 = sld [smem:[#allocation19_spill]] }
  0x18   : > { %s1084_s15 = smov [#allocation5]   ;;  %p809_p3 = scmp.lt.s32.totalorder %s1082_s24, 2 }
  0x19   : > { %p786_p1 = pneg %p1190_p13  ;;  %s213_s16 = sshll.u32 %s1084_s15, 4  ;;  %s214_s16 = int_to_ptr.vmem [resolvable:$true] %s213_s16 }
  0x1a   : > { %s1397_s3 = sld [smem:[#allocation20_spill]]  ;;  %p1208_p7 = pnand %p809_p3, %p1167_p5 }
  0x1b   : > { %p787_p2 = pnand %p786_p1, %p48_p4  ;;  %s1085_s28 = smov [#allocation7]  }
  0x1c   : > { %s227_s29 = sshll.u32 %s1085_s28, 4  ;;  %s241_s12 = sand.u32 1, %s1078_s23   ;;  %s228_s29 = int_to_ptr.vmem [resolvable:$true] %s227_s29 }
  0x1d   : > { %s211_s14 = sshll.u32 %s1396_s1, 4  ;;  %s1086_s13 = smov 384   ;;  %s212_s14 = int_to_ptr.hbm [resolvable:$true] %s211_s14 }
  0x1e   : > { %789 = dma.hbm_to_vmem [thread:$0]  (!%p787_p2), %s212_s14, 16, %s214_s16, [#allocation6]  }
  0x1f   : > { %s1087_s15 = smov 24   ;;  %s729_s26 = sshll.u32 %s241_s12, 4 }
  0x20   : > { %s225_s19 = sshll.u32 %s1397_s3, 4  ;;  %s750_s1 = sshll.u32 %s1082_s24, 4  ;;  %s226_s19 = int_to_ptr.hbm [resolvable:$true] %s225_s19 }
  0x21   : > { %792 = dma.hbm_to_vmem [thread:$0]  (!%p787_p2), %s226_s19, 6144, %s228_s29, [#allocation6], %s1086_s13, %s1086_s13, %s1087_s15  }
  0x22   : > { %s1399_s0 = sld [smem:[#allocation18_spill]]  ;;  %s245_s14 = scalar_lea.vmem [#allocation2], %s729_s26 }
  0x23   : > { %s253_s7 = sshll.u32 %s245_s14, 4  ;;  %s242_s3 = scalar_lea.sflag [#allocation3], %s241_s12  ;;  %s254_s7 = int_to_ptr.vmem [resolvable:$true] %s253_s7 }
  0x24   : > { %p926_p8 = pneg %p1208_p7 }
  0x28   : > { %s250_s18 = scalar_lea.hbm %s1399_s0, %s750_s1  ;;  %s929_s13 = scalar_lea.hbm %s1399_s0, 32 }
  0x29   : > { %s251_s16 = sshll.u32 %s250_s18, 4  ;;  %s252_s16 = int_to_ptr.hbm [resolvable:$true] %s251_s16 }
  0x2a   : > { %s922_s27 = sshra.s32 %s252_s16, 4  ;;  %s923_s27 = int_to_ptr.hbm [resolvable:$true] %s922_s27 }
  0x2b   : > { %s924_s28 = scalar_lea.hbm %s923_s27, 16  ;;  %p930_p1 = scmp.lt.s32.totalorder %s923_s27, %s1399_s0 }
  0x2c   : > { %p925_p5 = scmp.ne.s32.totalorder %s923_s27, %s924_s28  ;;  %p931_p2 = scmp.lt.s32.totalorder %s929_s13, %s924_s28 }
  0x2e   : > { %p927_p9 = pnand %p926_p8, %p925_p5  ;;  %p932_p3 = por %p931_p2, %p930_p1 }
  0x30   : > { %p928_p10 = pneg %p927_p9 }
  0x32   : > { %p933_p0 = pnand %p932_p3, %p928_p10 }
  0x34   : > { %936 = shalt.err (!%p933_p0)
}
  0x35   : > { %s1088_s26 = smov 128   ;;  %s1089_s12 = smov 8  }
  0x36   : > { %796 = dma.hbm_to_vmem [thread:$0]  (!%p1208_p7), %s252_s16, 256, %s254_s7, %s242_s3, %s1088_s26, %s1088_s26, %s1089_s12  }
  0x37   : > { %265 = sbr.rel (%p1190_p13) target bundleno = 494 (0x1ee), region = 36  ;;  %s1230_s15 = sand.u32 (!%p1190_p13), 1, %s1074_s22  }
  0x38   : > { %s1233_s17 = sshll.u32 (!%p1190_p13), %s1230_s15, 4  ;;  %s268_s27 = scalar_lea.sflag (!%p1190_p13), [#allocation3], %s1230_s15 }
  0x39   : > { %s271_s18 = scalar_lea.vmem (!%p1190_p13), [#allocation2], %s1233_s17 }
  0x3c   : > { %1053 = dma.done.wait (%p1173_p6), %s268_s27, 256  }
  0x3d   : > { %1055 = vsyncadd (%p1173_p6), %s268_s27, 4294967040 }
  0x3e   : > { %1057 = dma.done.wait (%p48_p4), [#allocation6], 6160  }
  0x3f   : > { %1059 = vsyncadd (%p48_p4), [#allocation6], 4294961136  ;;  %v325_v0 = vld [vmem:[%s271_s18] sm:$0xff]  ;;  %v326_v1 = vld [vmem:[%s271_s18 + $0x8] sm:$0xff]  ;;  %v1090_v2 = vmov 128.0   ;;  %s1265_s11 = sshll.u32 %s1149_s25, 4 }
  0x40   : > { %329 = vadd.xlane.f32.xlu0 %v325_v0  ;;  %856 = vrcp.f32 %v1090_v2  ;;  %v431_v5 = vld [vmem:[#allocation7 + $0x168] sm:$0xff]  ;;  %v432_v6 = vld [vmem:[#allocation7 + $0x170] sm:$0xff]  ;;  %v433_v7 = vld [vmem:[#allocation7 + $0x178] sm:$0xff]  ;;  %s1268_s20 = scalar_lea.vmem [#allocation8], %s1233_s17  ;;  %s548_s16 = scalar_lea.hbm %s1381_s5, %s1265_s11 }
  0x41   : > { %434 = vmatpush.msra.mxu0 %v431_v5  ;;  %457 = vmatpush.msra.mxu1 %v432_v6  ;;  %v428_v8 = vld [vmem:[#allocation7 + $0x150] sm:$0xff]  ;;  %v429_v9 = vld [vmem:[#allocation7 + $0x158] sm:$0xff]  ;;  %v430_v10 = vld [vmem:[#allocation7 + $0x160] sm:$0xff]  ;;  %s313_s28 = scalar_lea.vmem [#allocation9], %s1233_s17  ;;  %s514_s29 = sand.u32 1, %s1149_s25  }
  0x42   : > { %480 = vmatpush.msra.mxu2 %v433_v7  ;;  %754 = vmatpush.msra.mxu3 %v431_v5  ;;  %v425_v23 = vld [vmem:[#allocation7 + $0x138] sm:$0xff]  ;;  %v426_v24 = vld [vmem:[#allocation7 + $0x140] sm:$0xff]  ;;  %v427_v25 = vld [vmem:[#allocation7 + $0x148] sm:$0xff]  ;;  %s549_s19 = sshll.u32 %s313_s28, 4  ;;  %s1277_s13 = sshll.u32 %s548_s16, 4  ;;  %s1279_s19 = int_to_ptr.vmem [resolvable:$true] %s549_s19  ;;  %s552_s13 = int_to_ptr.hbm [resolvable:$true] %s1277_s13 }
  0x43   : > { %435 = vmatpush.msra.mxu0 %v428_v8  ;;  %458 = vmatpush.msra.mxu1 %v429_v9  ;;  %v422_v26 = vld [vmem:[#allocation7 + $0x120] sm:$0xff]  ;;  %v423_v27 = vld [vmem:[#allocation7 + $0x128] sm:$0xff]  ;;  %v424_v28 = vld [vmem:[#allocation7 + $0x130] sm:$0xff]  ;;  %s1283_s30 = scalar_lea.vmem [#allocation11], %s1233_s17  ;;  %s531_s12 = scalar_lea.hbm %s1380_s4, %s1265_s11 }
  0x44   : > { %481 = vmatpush.msra.mxu2 %v430_v10  ;;  %755 = vmatpush.msra.mxu3 %v428_v8  ;;  %v419_v29 = vld [vmem:[#allocation7 + $0x108] sm:$0xff]  ;;  %v420_v30 = vld [vmem:[#allocation7 + $0x110] sm:$0xff]  ;;  %v421_v31 = vld [vmem:[#allocation7 + $0x118] sm:$0xff]  ;;  %s532_s27 = sshll.u32 %s1268_s20, 4  ;;  %s565_s3 = scalar_lea.hbm %s1382_s6, %s1265_s11  ;;  %s533_s27 = int_to_ptr.vmem [resolvable:$true] %s532_s27 }
  0x45   : > { %436 = vmatpush.msra.mxu0 %v425_v23  ;;  %459 = vmatpush.msra.mxu1 %v426_v24  ;;  %v416_v32 = vld [vmem:[#allocation7 + $0xf0] sm:$0xff]  ;;  %v417_v33 = vld [vmem:[#allocation7 + $0xf8] sm:$0xff]  ;;  %v418_v34 = vld [vmem:[#allocation7 + $0x100] sm:$0xff]  ;;  %s1295_s8 = scalar_lea.sflag [#allocation10], %s514_s29  ;;  %s966_s14 = sshra.s32 %s552_s13, 4  ;;  %s967_s14 = int_to_ptr.hbm [resolvable:$true] %s966_s14 }
  0x46   : > { %v857_v3 = vpop.eup %856  ;;  %482 = vmatpush.msra.mxu2 %v427_v25  ;;  %756 = vmatpush.msra.mxu3 %v425_v23  ;;  %v413_v35 = vld [vmem:[#allocation7 + $0xd8] sm:$0xff]  ;;  %v414_v36 = vld [vmem:[#allocation7 + $0xe0] sm:$0xff]  ;;  %v415_v37 = vld [vmem:[#allocation7 + $0xe8] sm:$0xff]  ;;  %s968_s7 = scalar_lea.hbm %s967_s14, 16  ;;  %s972_s1 = scalar_lea.hbm %s1381_s5, 32 }
  0x47   : > { %v334_v4 = vmul.f32 128.0, %v857_v3  ;;  %vm338_vm0 = vweird.f32 %v857_v3  ;;  %437 = vmatpush.msra.mxu0 %v422_v26  ;;  %460 = vmatpush.msra.mxu1 %v423_v27  ;;  %v410_v38 = vld [vmem:[#allocation7 + $0xc0] sm:$0xff]  ;;  %v411_v39 = vld [vmem:[#allocation7 + $0xc8] sm:$0xff]  ;;  %v412_v40 = vld [vmem:[#allocation7 + $0xd0] sm:$0xff]  ;;  %p969_p4 = scmp.ne.s32.totalorder %s967_s14, %s968_s7  ;;  %p973_p0 = scmp.lt.s32.totalorder %s967_s14, %s1381_s5 }
  0x48   : > { %331 = vadd.xlane.f32.xlu0 %v326_v1  ;;  %483 = vmatpush.msra.mxu2 %v424_v28  ;;  %v407_v41 = vld [vmem:[#allocation7 + $0xa8] sm:$0xff]  ;;  %v408_v42 = vld [vmem:[#allocation7 + $0xb0] sm:$0xff]  ;;  %v409_v43 = vld [vmem:[#allocation7 + $0xb8] sm:$0xff]  ;;  %p974_p7 = scmp.lt.s32.totalorder %s972_s1, %s968_s7 }
  0x49   : > { %v335_v11 = vsub.f32 1.0, %v334_v4  ;;  %757 = vmatpush.msra.mxu3 %v422_v26  ;;  %438 = vmatpush.msra.mxu0 %v419_v29  ;;  %v404_v44 = vld [vmem:[#allocation7 + $0x90] sm:$0xff]  ;;  %v405_v45 = vld [vmem:[#allocation7 + $0x98] sm:$0xff]  ;;  %v406_v46 = vld [vmem:[#allocation7 + $0xa0] sm:$0xff]  ;;  %p970_p6 = pnand %p969_p4, %p1182_p11 }
  0x4a   : > { %461 = vmatpush.msra.mxu1 %v420_v30  ;;  %484 = vmatpush.msra.mxu2 %v421_v31  ;;  %v401_v47 = vld [vmem:[#allocation7 + $0x78] sm:$0xff]  ;;  %v402_v48 = vld [vmem:[#allocation7 + $0x80] sm:$0xff]  ;;  %v403_v49 = vld [vmem:[#allocation7 + $0x88] sm:$0xff]  ;;  %p975_p5 = por %p974_p7, %p973_p0 }
  0x4b   : > { %v336_v12 = vmul.f32 %v857_v3, %v335_v11  ;;  %758 = vmatpush.msra.mxu3 %v419_v29  ;;  %439 = vmatpush.msra.mxu0 %v416_v32  ;;  %v398_v50 = vld [vmem:[#allocation7 + $0x60] sm:$0xff]  ;;  %v399_v51 = vld [vmem:[#allocation7 + $0x68] sm:$0xff]  ;;  %v400_v52 = vld [vmem:[#allocation7 + $0x70] sm:$0xff]  ;;  %p971_p13 = pneg %p970_p6 }
  0x4c   : > { %462 = vmatpush.msra.mxu1 %v417_v33  ;;  %485 = vmatpush.msra.mxu2 %v418_v34  ;;  %v395_v53 = vld [vmem:[#allocation7 + $0x48] sm:$0xff]  ;;  %v396_v54 = vld [vmem:[#allocation7 + $0x50] sm:$0xff]  ;;  %v397_v55 = vld [vmem:[#allocation7 + $0x58] sm:$0xff] }
  0x4d   : > { %v337_v13 = vadd.f32 %v857_v3, %v336_v12  ;;  %759 = vmatpush.msra.mxu3 %v416_v32  ;;  %440 = vmatpush.msra.mxu0 %v413_v35  ;;  %v392_v56 = vld [vmem:[#allocation7 + $0x30] sm:$0xff]  ;;  %v393_v57 = vld [vmem:[#allocation7 + $0x38] sm:$0xff]  ;;  %v394_v58 = vld [vmem:[#allocation7 + $0x40] sm:$0xff]  ;;  %p976_p8 = pnand %p975_p5, %p971_p13 }
  0x4e   : > { %463 = vmatpush.msra.mxu1 %v414_v36  ;;  %486 = vmatpush.msra.mxu2 %v415_v37  ;;  %v389_v59 = vld [vmem:[#allocation7 + $0x18] sm:$0xff]  ;;  %v390_v60 = vld [vmem:[#allocation7 + $0x20] sm:$0xff]  ;;  %v391_v61 = vld [vmem:[#allocation7 + $0x28] sm:$0xff] }
  0x4f   : > { %v1245_v14 = vsel %vm338_vm0, %v857_v3, %v337_v13  ;;  %760 = vmatpush.msra.mxu3 %v413_v35  ;;  %441 = vmatpush.msra.mxu0 %v410_v38  ;;  %v386_v62 = vld [vmem:[#allocation7] sm:$0xff]  ;;  %v387_v63 = vld [vmem:[#allocation7 + $0x8] sm:$0xff] }
  0x50   : > { %464 = vmatpush.msra.mxu1 %v411_v39  ;;  %487 = vmatpush.msra.mxu2 %v412_v40 }
  0x51   : > { %761 = vmatpush.msra.mxu3 %v410_v38  ;;  %442 = vmatpush.msra.mxu0 %v407_v41 }
  0x52   : > { %465 = vmatpush.msra.mxu1 %v408_v42  ;;  %488 = vmatpush.msra.mxu2 %v409_v43 }
  0x53   : > { %762 = vmatpush.msra.mxu3 %v407_v41  ;;  %443 = vmatpush.msra.mxu0 %v404_v44 }
  0x54   : > { %466 = vmatpush.msra.mxu1 %v405_v45  ;;  %489 = vmatpush.msra.mxu2 %v406_v46 }
  0x55   : > { %763 = vmatpush.msra.mxu3 %v404_v44  ;;  %444 = vmatpush.msra.mxu0 %v401_v47 }
  0x56   : > { %467 = vmatpush.msra.mxu1 %v402_v48  ;;  %490 = vmatpush.msra.mxu2 %v403_v49 }
  0x57   : > { %764 = vmatpush.msra.mxu3 %v401_v47  ;;  %445 = vmatpush.msra.mxu0 %v398_v50 }
  0x58   : > { %468 = vmatpush.msra.mxu1 %v399_v51  ;;  %491 = vmatpush.msra.mxu2 %v400_v52 }
  0x59   : > { %765 = vmatpush.msra.mxu3 %v398_v50  ;;  %446 = vmatpush.msra.mxu0 %v395_v53 }
  0x5a   : > { %469 = vmatpush.msra.mxu1 %v396_v54  ;;  %492 = vmatpush.msra.mxu2 %v397_v55 }
  0x5b   : > { %766 = vmatpush.msra.mxu3 %v395_v53  ;;  %447 = vmatpush.msra.mxu0 %v392_v56 }
  0x5c   : > { %470 = vmatpush.msra.mxu1 %v393_v57  ;;  %493 = vmatpush.msra.mxu2 %v394_v58 }
  0x5d   : > { %767 = vmatpush.msra.mxu3 %v392_v56  ;;  %448 = vmatpush.msra.mxu0 %v389_v59 }
  0x5e   : > { %471 = vmatpush.msra.mxu1 %v390_v60  ;;  %494 = vmatpush.msra.mxu2 %v391_v61 }
  0x5f   : > { %768 = vmatpush.msra.mxu3 %v389_v59  ;;  %449 = vmatpush.msra.mxu0 %v386_v62 }
  0x60   : > { %472 = vmatpush.msra.mxu1 %v387_v63 }
  0x61   : > { %769 = vmatpush.msra.mxu3 %v386_v62 }
  0xb3   : > { %v330_v15 = vpop.xlane.xlu0 %329 }
  0xb4   : > { %v340_v16 = vmul.f32 %v1245_v14, %v330_v15 }
  0xb6   : > { %v1248_v17 = vsub.f32 %v325_v0, %v340_v16  ;;  %v388_v0 = vld [vmem:[#allocation7 + $0x10] sm:$0xff]  ;;  %v854_v16 = vld [vmem:[#allocation5] ss:$0 sm:$0xff] }
  0xb7   : > { %495 = vmatpush.msra.mxu2 %v388_v0 }
  0xb8   : > { %v344_v18 = vmul.f32 %v1248_v17, %v1248_v17 }
  0xba   : > { %346 = vadd.xlane.f32.xlu1 %v344_v18 }
  0xbb   : > { %v332_v19 = vpop.xlane.xlu0 %331 }
  0xbc   : > { %v341_v20 = vmul.f32 %v1245_v14, %v332_v19 }
  0xbe   : > { %v1253_v21 = vsub.f32 %v326_v1, %v341_v20 }
  0xc0   : > { %v345_v22 = vmul.f32 %v1253_v21, %v1253_v21 }
  0xc2   : > { %348 = vadd.xlane.f32.xlu1 %v345_v22 }
 0x12d   : > { %v347_v1 = vpop.xlane.xlu1 %346 }
 0x12e   : > { %v350_v2 = vmul.f32 %v347_v1, %v1245_v14 }
 0x130   : > { %v352_v3 = vadd.f32 1e-06, %v350_v2 }
 0x132   : > { %858 = vrsqrt.f32 %v352_v3  ;;  %vm360_vm2 = vweird.f32 %v352_v3 }
 0x135   : > { %v349_v4 = vpop.xlane.xlu1 %348 }
 0x136   : > { %v351_v5 = vmul.f32 %v349_v4, %v1245_v14  ;;  %v855_v14 = vld [vmem:[%s1378_s2] ss:$0 sm:$0xff] }
 0x138   : > { %v859_v6 = vpop.eup %858  ;;  %v353_v7 = vadd.f32 1e-06, %v351_v5 }
 0x139   : > { %v355_v8 = vmul.f32 %v859_v6, %v352_v3  ;;  %vm361_vm1 = vweird.f32 %v859_v6 }
 0x13a   : > { %860 = vrsqrt.f32 %v353_v7  ;;  %vm362_vm3 = vmor %vm360_vm2, %vm361_vm1  ;;  %vm370_vm5 = vweird.f32 %v353_v7 }
 0x13b   : > { %v356_v9 = vmul.f32 %v859_v6, %v355_v8 }
 0x13d   : > { %v357_v10 = vmul.f32 0.5, %v356_v9 }
 0x13f   : > { %v358_v11 = vsub.f32 1.5, %v357_v10 }
 0x140   : > { %v861_v12 = vpop.eup %860 }
 0x141   : > { %v359_v13 = vmul.f32 %v859_v6, %v358_v11  ;;  %v365_v15 = vmul.f32 %v861_v12, %v353_v7  ;;  %vm371_vm4 = vweird.f32 %v861_v12 }
 0x142   : > { %vm372_vm6 = vmor %vm370_vm5, %vm371_vm4 }
 0x143   : > { %v363_v18 = vsel %vm362_vm3, %v859_v6, %v359_v13  ;;  %v366_v19 = vmul.f32 %v861_v12, %v365_v15 }
 0x144   : > { %v374_v20 = vmul.f32 %v363_v18, %v1248_v17 }
 0x145   : > { %v367_v22 = vmul.f32 0.5, %v366_v19 }
 0x146   : > { %v379_v23 = vmul.f32 %v854_v16, %v374_v20 }
 0x147   : > { %v368_v24 = vsub.f32 1.5, %v367_v22 }
 0x148   : > { %v384_v25 = vadd.f32 %v855_v14, %v379_v23 }
 0x149   : > { %v369_v26 = vmul.f32 %v861_v12, %v368_v24 }
 0x14a   : > { %450 = vmatmul.f32.vlgmr.msra.gmra.mxu0 %v384_v25  ;;  %473 = vmatmul.f32.vlgmr.msra.gmra.mxu1 %v384_v25 }
 0x14b   : > { %v373_v27 = vsel %vm372_vm6, %v861_v12, %v369_v26  ;;  %496 = vmatmul.f32.vlgmr.msra.gmra.mxu2 %v384_v25 }
 0x14c   : > { %v375_v17 = vmul.f32 %v373_v27, %v1253_v21 }
 0x14e   : > { %v380_v28 = vmul.f32 %v854_v16, %v375_v17 }
 0x150   : > { %v385_v29 = vadd.f32 %v855_v14, %v380_v28 }
 0x152   : > { %453 = vmatmul.f32.vlgmr.msra.gmra.mxu3 %v385_v29  ;;  %476 = vmatmul.f32.gmra.mxu1 %v385_v29 }
 0x153   : > { %499 = vmatmul.f32.gmra.mxu2 %v385_v29 }
 0x1c7   : > { %v451_v30 = vpop.f32.mrf.mxu0  ;;  %v474_v31 = vpop.f32.mrf.mxu1 }
 0x1c8   : > { %503 = vst [vmem:[%s1268_s20] sm:$0xff] %v451_v30 }
 0x1c9   : > { %505 = vst [vmem:[%s313_s28] sm:$0xff] %v474_v31 }
 0x1ce   : > { %v497_v21 = vpop.f32.mrf.mxu2 }
 0x1cf   : > { %507 = vst [vmem:[%s1283_s30] sm:$0xff] %v497_v21  ;;  %v477_v32 = vpop.f32.mrf.mxu1 }
 0x1d0   : > { %506 = vst [vmem:[%s313_s28 + $0x8] sm:$0xff] %v477_v32 }
 0x1d1   : > { %979 = shalt.err (!%p976_p8)
}
 0x1d2   : > { %s1091_s11 = smov 128   ;;  %s1092_s28 = smov 8  }
 0x1d3   : > { %781 = dma.vmem_to_hbm [thread:$0]  (%p1182_p11), %s1279_s19, 256, %s552_s13, %s1295_s8, %s1091_s11, %s1091_s11, %s1092_s28  }
 0x1d4   : > { %s1312_s0 = sshll.u32 %s531_s12, 4  ;;  %s566_s29 = sshll.u32 %s1283_s30, 4  ;;  %s535_s0 = int_to_ptr.hbm [resolvable:$true] %s1312_s0  ;;  %s1318_s29 = int_to_ptr.vmem [resolvable:$true] %s566_s29 }
 0x1d5   : > { %s1315_s25 = sshll.u32 %s565_s3, 4  ;;  %v454_v33 = vpop.f32.mrf.mxu3  ;;  %s510_s18 = scalar_lea.sflag [#allocation4], %s1230_s15  ;;  %s569_s25 = int_to_ptr.hbm [resolvable:$true] %s1315_s25 }
 0x1d6   : > { %504 = vst [vmem:[%s1268_s20 + $0x8] sm:$0xff] %v454_v33  ;;  %v500_v34 = vpop.f32.mrf.mxu2  ;;  %s994_s14 = sshra.s32 %s535_s0, 4  ;;  %s1000_s3 = scalar_lea.hbm %s1380_s4, 32  ;;  %s995_s14 = int_to_ptr.hbm [resolvable:$true] %s994_s14 }
 0x1d7   : > { %508 = vst [vmem:[%s1283_s30 + $0x8] sm:$0xff] %v500_v34  ;;  %s996_s19 = scalar_lea.hbm %s995_s14, 16  ;;  %p1001_p2 = scmp.lt.s32.totalorder %s995_s14, %s1380_s4 }
 0x1d8   : > { %p997_p9 = scmp.ne.s32.totalorder %s995_s14, %s996_s19  ;;  %p1002_p3 = scmp.lt.s32.totalorder %s1000_s3, %s996_s19 }
 0x1da   : > { %p998_p10 = pnand %p997_p9, %p1182_p11  ;;  %p1003_p4 = por %p1002_p3, %p1001_p2 }
 0x1dc   : > { %p999_p1 = pneg %p998_p10 }
 0x1de   : > { %p1004_p6 = pnand %p1003_p4, %p999_p1 }
 0x1e0   : > { %1007 = shalt.err (!%p1004_p6)
}
 0x1e1   : > { %780 = dma.vmem_to_hbm [thread:$0]  (%p1182_p11), %s533_s27, 256, %s535_s0, %s510_s18, %s1091_s11, %s1091_s11, %s1092_s28  }
 0x1e2   : > { %s1022_s15 = sshra.s32 %s569_s25, 4  ;;  %s1028_s1 = scalar_lea.hbm %s1382_s6, 32  ;;  %s1023_s15 = int_to_ptr.hbm [resolvable:$true] %s1022_s15 }
 0x1e3   : > { %s1024_s20 = scalar_lea.hbm %s1023_s15, 16  ;;  %p1029_p5 = scmp.lt.s32.totalorder %s1023_s15, %s1382_s6 }
 0x1e4   : > { %p1025_p13 = scmp.ne.s32.totalorder %s1023_s15, %s1024_s20  ;;  %p1030_p8 = scmp.lt.s32.totalorder %s1028_s1, %s1024_s20 }
 0x1e6   : > { %p1026_p0 = pnand %p1025_p13, %p1182_p11  ;;  %p1031_p9 = por %p1030_p8, %p1029_p5 }
 0x1e8   : > { %p1027_p7 = pneg %p1026_p0 }
 0x1ea   : > { %p1032_p10 = pnand %p1031_p9, %p1027_p7 }
 0x1ec   : > { %1035 = shalt.err (!%p1032_p10)
}
 0x1ed   : > { %782 = dma.vmem_to_hbm [thread:$0]  (%p1182_p11), %s1318_s29, 256, %s569_s25, %s1295_s8, %s1091_s11, %s1091_s11, %s1092_s28  }
 0x1ee PF: > { %s583_s27 = sand.u32 1, %s1070_s21   ;;  %p1400_p1 = scmp.ge.s32.totalorder %s1082_s24, 2 }
 0x1ef   : > { %s584_s0 = scalar_lea.sflag [#allocation4], %s583_s27 }
 0x1f0   : > { %p798_p2 = pnand %p1400_p1, %p1186_p12 }
 0x1f2   : > { %p799_p3 = pneg %p798_p2 }
 0x1f4   : > { %1061 = dma.done.wait (%p799_p3), %s584_s0, 256  }
 0x1f5   : > { %1063 = vsyncadd (%p799_p3), %s584_s0, 4294967040  ;;  %s1401_s9 = sadd.s32 4294967294, %s1082_s24  }
 0x1f6   : > { %s593_s18 = sand.u32 1, %s1401_s9  }
 0x1f7   : > { %s594_s19 = scalar_lea.sflag [#allocation10], %s593_s18 }
 0x1f8   : > { %1065 = dma.done.wait (%p799_p3), %s594_s19, 512  }
 0x1f9   : > { %1067 = vsyncadd (%p799_p3), %s594_s19, 4294966784  ;;  %s1402_s24 = sld [smem:[#allocation16_spill]]  ;;  %s1404_s21 = smov %s1074_s22 }
 0x1fa   : > { %s1403_s8 = sld [smem:[#allocation17_spill]]  ;;  %s1405_s22 = smov %s1078_s23 }
 0x1ff   : > { %p24_p11 = scmp.ge.s32.totalorder %s1402_s24, 4  }
 0x200   : > { %s1406_s23 = smov %s1403_s8 }
 0x201   :  { %26 = sbr.rel (!%p24_p11) target bundleno = 12 (0xc), region = 121 }
 0x206   :  { %610 = vsyncpa [#allocation3], 1 }
 0x207   :  { %612 = vsyncpa [#allocation3 + $0x1], 1 }
 0x208   :  { %613 = vsyncpa [#allocation6], 1 }
 0x209   :  { %614 = vsyncpa [#allocation4], 1 }
 0x20a   :  { %616 = vsyncpa [#allocation4 + $0x1], 1 }
 0x20b   :  { %617 = vsyncpa [#allocation10], 1 }
 0x20c   :  { %619 = vsyncpa [#allocation10 + $0x1], 1 }

</bundles_post_ra>
